<compile_context>
chip_gen: v7x
topology: tpu7x:2x2x1
jax: 0.10.0
libtpu: 0.0.40
codegen_flags: <defaults>
</compile_context>

<pallas_src>
import functools

import jax
import jax.numpy as jnp
from jax.experimental import pallas as pl
from jax.experimental.pallas import tpu as pltpu

LAYERS = [2, 64, 64, 64, 2]


def _round_up(v, m):
    return ((v + m - 1) // m) * m


def mlp_kernel(xt_ref, w1x_ref, w1t_ref, b1_ref,
               w2_ref, b2_ref, w3_ref, b3_ref, w4_ref, b4_ref,
               o_ref, *, acts_dtype):
    """One batch tile of the 4-layer tanh MLP, batch on the lane axis."""
    x_row = xt_ref[0:1, :]                  # (1, tile)
    t_row = xt_ref[1:2, :]                  # (1, tile)

    # Layer 1 (K=2 contraction) on the VPU: two broadcast FMAs, no MXU pass.
    pre = w1x_ref[...] * x_row + w1t_ref[...] * t_row + b1_ref[...]   # (64, tile) f32
    h = jnp.tanh(pre.astype(acts_dtype))

    # Hidden layers on the MXU: (64,64) @ (64,tile) with f32 accumulation.
    pre = jnp.dot(w2_ref[...], h, preferred_element_type=jnp.float32) + b2_ref[...]
    h = jnp.tanh(pre.astype(acts_dtype))
    pre = jnp.dot(w3_ref[...], h, preferred_element_type=jnp.float32) + b3_ref[...]
    h = jnp.tanh(pre.astype(acts_dtype))

    # Output layer: (2,64) @ (64,tile) -> (2, tile), lane-dense store.
    out = jnp.dot(w4_ref[...], h, preferred_element_type=jnp.float32) + b4_ref[...]
    o_ref[...] = out.astype(o_ref.dtype)


def init_params(key, layers=LAYERS):
    """Xavier-normal weights in PyTorch (out, in) layout, zero biases."""
    params = []
    for i in range(len(layers) - 1):
        fan_in, fan_out = layers[i], layers[i + 1]
        key, sub = jax.random.split(key)
        std = (2.0 / (fan_in + fan_out)) ** 0.5
        w = std * jax.random.normal(sub, (fan_out, fan_in), dtype=jnp.float32)
        b = jnp.zeros((fan_out,), dtype=jnp.float32)
        params.append((w, b))
    return params


def schrodinger_pinn_forward(x, t, params, *, tile_n=2048, use_bf16=False,
                             return_nx2=True):
    """Pallas forward pass of SchrodingerPINN1D: x,t (N,1) -> (N, 2)."""
    assert tile_n % 128 == 0, "tile_n must be a multiple of 128 for lane-dense blocks"
    N = x.shape[0]

    # Effective tile:
    #  - never larger than the padded batch (no compute on pure padding),
    #  - for batches big enough to split, keep >= 2 grid tiles so the
    #    "parallel" axis can be sharded across both v7x TensorCores.
    n_pad_min = _round_up(N, 128)
    tile = min(tile_n, n_pad_min)
    if n_pad_min >= 256:
        tile = min(tile, _round_up(-(-N // 2), 128))
    tile = max(tile, 128)

    num_tiles = pl.cdiv(N, tile)
    n_pad = num_tiles * tile

    def to_lane_row(v):
        v = v.astype(jnp.float32).reshape(-1)
        return jnp.pad(v, (0, n_pad - v.shape[0]))

    # Fuse x and t into a single (2, n_pad) slab: one input DMA per grid step.
    xt = jnp.stack([to_lane_row(x), to_lane_row(t)], axis=0)

    (w1, b1), (w2, b2), (w3, b3), (w4, b4) = params
    mm_dtype = jnp.bfloat16 if use_bf16 else jnp.float32

    w1x = w1[:, 0:1].astype(jnp.float32)    # (64, 1) column multiplying x (VPU)
    w1t = w1[:, 1:2].astype(jnp.float32)    # (64, 1) column multiplying t (VPU)
    w2c = w2.astype(mm_dtype)               # MXU operands pre-cast in the wrapper
    w3c = w3.astype(mm_dtype)
    w4c = w4.astype(mm_dtype)
    b1c = b1.reshape(-1, 1).astype(jnp.float32)
    b2c = b2.reshape(-1, 1).astype(jnp.float32)
    b3c = b3.reshape(-1, 1).astype(jnp.float32)
    b4c = b4.reshape(-1, 1).astype(jnp.float32)

    # Weights/biases are small resident VMEM constants: no blocking, no
    # per-step block-index bookkeeping, no double-buffering.
    resident = pl.BlockSpec(memory_space=pltpu.MemorySpace.VMEM)
    in_specs = [
        pl.BlockSpec((2, tile), lambda i: (0, i)),      # fused x/t tile
        resident, resident, resident,                   # layer 1
        resident, resident,                             # layer 2
        resident, resident,                             # layer 3
        resident, resident,                             # layer 4
    ]
    out_spec = pl.BlockSpec((LAYERS[-1], tile), lambda i: (0, i))

    cp_kwargs = dict(dimension_semantics=("parallel",))
    if tile >= 16384:
        # Only very large tiles need extra scoped-VMEM headroom (v5e default 16 MiB).
        cp_kwargs["vmem_limit_bytes"] = 48 * 1024 * 1024

    kernel = functools.partial(mlp_kernel, acts_dtype=mm_dtype)

    out_t = pl.pallas_call(
        kernel,
        out_shape=jax.ShapeDtypeStruct((LAYERS[-1], n_pad), jnp.float32),
        grid_spec=pltpu.PrefetchScalarGridSpec(
            num_scalar_prefetch=0,
            grid=(num_tiles,),
            in_specs=in_specs,
            out_specs=out_spec,
        ),
        compiler_params=pltpu.CompilerParams(**cp_kwargs),
    )(xt, w1x, w1t, b1c, w2c, b2c, w3c, b3c, w4c, b4c)

    out_t = out_t[:, :N]                    # drop batch padding, (2, N)
    return out_t.T if return_nx2 else out_t


def reference_forward(x, t, params):
    """Plain-JAX reference matching the PyTorch module exactly."""
    u = jnp.concatenate([x, t], axis=1).astype(jnp.float32)
    for (w, b) in params[:-1]:
        u = jnp.tanh(u @ w.T + b)
    w, b = params[-1]
    return u @ w.T + b


if __name__ == "__main__":
    key = jax.random.PRNGKey(0)
    kp, kx, kt, kx2, kt2 = jax.random.split(key, 5)

    params = init_params(kp)

    # Small batch of collocation points (single padded tile).
    N = 16
    x = jax.random.normal(kx, (N, 1), dtype=jnp.float32)
    t = jax.random.normal(kt, (N, 1), dtype=jnp.float32)
    out = jax.block_until_ready(schrodinger_pinn_forward(x, t, params))
    ref = reference_forward(x, t, params)
    assert out.shape == (N, 2)
    assert jnp.allclose(out, ref, atol=1e-4, rtol=1e-4)

    # Multi-tile batch: exercises the >=2-tile grid split (both v7x TCs).
    N2 = 300
    x2 = jax.random.normal(kx2, (N2, 1), dtype=jnp.float32)
    t2 = jax.random.normal(kt2, (N2, 1), dtype=jnp.float32)
    out2 = jax.block_until_ready(schrodinger_pinn_forward(x2, t2, params))
    ref2 = reference_forward(x2, t2, params)
    assert out2.shape == (N2, 2)
    assert jnp.allclose(out2, ref2, atol=1e-4, rtol=1e-4)

    # Optional bf16-MXU/tanh path (single-pass matmuls, bf16 EUP on v6e/v7x);
    # validated at a looser tolerance since activation precision is reduced.
    out_bf16 = jax.block_until_ready(
        schrodinger_pinn_forward(x2, t2, params, use_bf16=True))
    assert out_bf16.shape == (N2, 2)
    assert jnp.allclose(out_bf16, ref2, atol=3e-2, rtol=3e-2)

    print("KERNEL_OK")
</pallas_src>

<mosaic_0001>
module attributes {stable_mosaic.version = 11 : i64} {
  func.func @mlp_kernel(%arg0: i32, %arg1: memref<2x128xf32, #tpu.memory_space<vmem>>, %arg2: memref<64x1xf32, #tpu.memory_space<vmem>>, %arg3: memref<64x1xf32, #tpu.memory_space<vmem>>, %arg4: memref<64x1xf32, #tpu.memory_space<vmem>>, %arg5: memref<64x64xf32, #tpu.memory_space<vmem>>, %arg6: memref<64x1xf32, #tpu.memory_space<vmem>>, %arg7: memref<64x64xf32, #tpu.memory_space<vmem>>, %arg8: memref<64x1xf32, #tpu.memory_space<vmem>>, %arg9: memref<2x64xf32, #tpu.memory_space<vmem>>, %arg10: memref<2x1xf32, #tpu.memory_space<vmem>>, %arg11: memref<2x128xf32, #tpu.memory_space<vmem>>) attributes {dimension_semantics = [#tpu.dimension_semantics<parallel>], iteration_bounds = array<i64: 1>, scalar_prefetch = 0 : i64, scratch_operands = 0 : i64, tpu.core_type = #tpu.core_type<tc>, window_params = [{transform_indices = @transform_0, window_bounds = array<i64: 2, 128>}, {pipeline_mode = #tpu.pipeline_mode<synchronous>, transform_indices = @transform_1, window_bounds = array<i64: 64, 1>}, {pipeline_mode = #tpu.pipeline_mode<synchronous>, transform_indices = @transform_2, window_bounds = array<i64: 64, 1>}, {pipeline_mode = #tpu.pipeline_mode<synchronous>, transform_indices = @transform_3, window_bounds = array<i64: 64, 1>}, {pipeline_mode = #tpu.pipeline_mode<synchronous>, transform_indices = @transform_4, window_bounds = array<i64: 64, 64>}, {pipeline_mode = #tpu.pipeline_mode<synchronous>, transform_indices = @transform_5, window_bounds = array<i64: 64, 1>}, {pipeline_mode = #tpu.pipeline_mode<synchronous>, transform_indices = @transform_6, window_bounds = array<i64: 64, 64>}, {pipeline_mode = #tpu.pipeline_mode<synchronous>, transform_indices = @transform_7, window_bounds = array<i64: 64, 1>}, {pipeline_mode = #tpu.pipeline_mode<synchronous>, transform_indices = @transform_8, window_bounds = array<i64: 2, 64>}, {pipeline_mode = #tpu.pipeline_mode<synchronous>, transform_indices = @transform_9, window_bounds = array<i64: 2, 1>}, {transform_indices = @transform_10, window_bounds = array<i64: 2, 128>}]} {
    %c0 = arith.constant 0 : index
    %c0_0 = arith.constant 0 : index
    %0 = vector.load %arg1[%c0, %c0_0] : memref<2x128xf32, #tpu.memory_space<vmem>>, vector<1x128xf32>
    %c1 = arith.constant 1 : index
    %c0_1 = arith.constant 0 : index
    %1 = vector.load %arg1[%c1, %c0_1] : memref<2x128xf32, #tpu.memory_space<vmem>>, vector<1x128xf32>
    %c0_2 = arith.constant 0 : index
    %c0_3 = arith.constant 0 : index
    %2 = vector.load %arg2[%c0_2, %c0_3] : memref<64x1xf32, #tpu.memory_space<vmem>>, vector<64x1xf32>
    %3 = vector.broadcast %2 : vector<64x1xf32> to vector<64x128xf32>
    %4 = vector.broadcast %0 : vector<1x128xf32> to vector<64x128xf32>
    %5 = arith.mulf %3, %4 : vector<64x128xf32>
    %c0_4 = arith.constant 0 : index
    %c0_5 = arith.constant 0 : index
    %6 = vector.load %arg3[%c0_4, %c0_5] : memref<64x1xf32, #tpu.memory_space<vmem>>, vector<64x1xf32>
    %7 = vector.broadcast %6 : vector<64x1xf32> to vector<64x128xf32>
    %8 = vector.broadcast %1 : vector<1x128xf32> to vector<64x128xf32>
    %9 = arith.mulf %7, %8 : vector<64x128xf32>
    %10 = arith.addf %5, %9 : vector<64x128xf32>
    %c0_6 = arith.constant 0 : index
    %c0_7 = arith.constant 0 : index
    %11 = vector.load %arg4[%c0_6, %c0_7] : memref<64x1xf32, #tpu.memory_space<vmem>>, vector<64x1xf32>
    %12 = vector.broadcast %11 : vector<64x1xf32> to vector<64x128xf32>
    %13 = arith.addf %10, %12 : vector<64x128xf32>
    %14 = math.tanh %13 : vector<64x128xf32>
    %c0_8 = arith.constant 0 : index
    %c0_9 = arith.constant 0 : index
    %15 = vector.load %arg5[%c0_8, %c0_9] : memref<64x64xf32, #tpu.memory_space<vmem>>, vector<64x64xf32>
    %cst = arith.constant dense<0.000000e+00> : vector<64x128xf32>
    %16 = tpu.matmul %15, %14, %cst {dimension_numbers = #tpu.dot_dimension_numbers<[1], [0], [0], [1], [0, 0, 1, 1], [], []>} : vector<64x64xf32>, vector<64x128xf32>, vector<64x128xf32> -> vector<64x128xf32>
    %c0_10 = arith.constant 0 : index
    %c0_11 = arith.constant 0 : index
    %17 = vector.load %arg6[%c0_10, %c0_11] : memref<64x1xf32, #tpu.memory_space<vmem>>, vector<64x1xf32>
    %18 = vector.broadcast %17 : vector<64x1xf32> to vector<64x128xf32>
    %19 = arith.addf %16, %18 : vector<64x128xf32>
    %20 = math.tanh %19 : vector<64x128xf32>
    %c0_12 = arith.constant 0 : index
    %c0_13 = arith.constant 0 : index
    %21 = vector.load %arg7[%c0_12, %c0_13] : memref<64x64xf32, #tpu.memory_space<vmem>>, vector<64x64xf32>
    %cst_14 = arith.constant dense<0.000000e+00> : vector<64x128xf32>
    %22 = tpu.matmul %21, %20, %cst_14 {dimension_numbers = #tpu.dot_dimension_numbers<[1], [0], [0], [1], [0, 0, 1, 1], [], []>} : vector<64x64xf32>, vector<64x128xf32>, vector<64x128xf32> -> vector<64x128xf32>
    %c0_15 = arith.constant 0 : index
    %c0_16 = arith.constant 0 : index
    %23 = vector.load %arg8[%c0_15, %c0_16] : memref<64x1xf32, #tpu.memory_space<vmem>>, vector<64x1xf32>
    %24 = vector.broadcast %23 : vector<64x1xf32> to vector<64x128xf32>
    %25 = arith.addf %22, %24 : vector<64x128xf32>
    %26 = math.tanh %25 : vector<64x128xf32>
    %c0_17 = arith.constant 0 : index
    %c0_18 = arith.constant 0 : index
    %27 = vector.load %arg9[%c0_17, %c0_18] : memref<2x64xf32, #tpu.memory_space<vmem>>, vector<2x64xf32>
    %cst_19 = arith.constant dense<0.000000e+00> : vector<2x128xf32>
    %28 = tpu.matmul %27, %26, %cst_19 {dimension_numbers = #tpu.dot_dimension_numbers<[1], [0], [0], [1], [0, 0, 1, 1], [], []>} : vector<2x64xf32>, vector<64x128xf32>, vector<2x128xf32> -> vector<2x128xf32>
    %c0_20 = arith.constant 0 : index
    %c0_21 = arith.constant 0 : index
    %29 = vector.load %arg10[%c0_20, %c0_21] : memref<2x1xf32, #tpu.memory_space<vmem>>, vector<2x1xf32>
    %30 = vector.broadcast %29 : vector<2x1xf32> to vector<2x128xf32>
    %31 = arith.addf %28, %30 : vector<2x128xf32>
    %c0_22 = arith.constant 0 : index
    %c0_23 = arith.constant 0 : index
    %32 = vector.load %arg11[%c0_22, %c0_23] : memref<2x128xf32, #tpu.memory_space<vmem>>, vector<2x128xf32>
    tpu.vector_store %arg11[%c0_22, %c0_23], %31 {strides = array<i32>} : memref<2x128xf32, #tpu.memory_space<vmem>>, vector<2x128xf32>,
    return
  }
  func.func @transform_0(%arg0: i32) -> (i32, i32) {
    %c0_i32 = arith.constant 0 : i32
    %c0_i32_0 = arith.constant 0 : i32
    return %c0_i32, %arg0 : i32, i32
  }
  func.func @transform_1(%arg0: i32) -> (i32, i32) {
    %c0_i32 = arith.constant 0 : i32
    %c0_i32_0 = arith.constant 0 : i32
    %c0_i32_1 = arith.constant 0 : i32
    return %c0_i32, %c0_i32_0 : i32, i32
  }
  func.func @transform_2(%arg0: i32) -> (i32, i32) {
    %c0_i32 = arith.constant 0 : i32
    %c0_i32_0 = arith.constant 0 : i32
    %c0_i32_1 = arith.constant 0 : i32
    return %c0_i32, %c0_i32_0 : i32, i32
  }
  func.func @transform_3(%arg0: i32) -> (i32, i32) {
    %c0_i32 = arith.constant 0 : i32
    %c0_i32_0 = arith.constant 0 : i32
    %c0_i32_1 = arith.constant 0 : i32
    return %c0_i32, %c0_i32_0 : i32, i32
  }
  func.func @transform_4(%arg0: i32) -> (i32, i32) {
    %c0_i32 = arith.constant 0 : i32
    %c0_i32_0 = arith.constant 0 : i32
    %c0_i32_1 = arith.constant 0 : i32
    return %c0_i32, %c0_i32_0 : i32, i32
  }
  func.func @transform_5(%arg0: i32) -> (i32, i32) {
    %c0_i32 = arith.constant 0 : i32
    %c0_i32_0 = arith.constant 0 : i32
    %c0_i32_1 = arith.constant 0 : i32
    return %c0_i32, %c0_i32_0 : i32, i32
  }
  func.func @transform_6(%arg0: i32) -> (i32, i32) {
    %c0_i32 = arith.constant 0 : i32
    %c0_i32_0 = arith.constant 0 : i32
    %c0_i32_1 = arith.constant 0 : i32
    return %c0_i32, %c0_i32_0 : i32, i32
  }
  func.func @transform_7(%arg0: i32) -> (i32, i32) {
    %c0_i32 = arith.constant 0 : i32
    %c0_i32_0 = arith.constant 0 : i32
    %c0_i32_1 = arith.constant 0 : i32
    return %c0_i32, %c0_i32_0 : i32, i32
  }
  func.func @transform_8(%arg0: i32) -> (i32, i32) {
    %c0_i32 = arith.constant 0 : i32
    %c0_i32_0 = arith.constant 0 : i32
    %c0_i32_1 = arith.constant 0 : i32
    return %c0_i32, %c0_i32_0 : i32, i32
  }
  func.func @transform_9(%arg0: i32) -> (i32, i32) {
    %c0_i32 = arith.constant 0 : i32
    %c0_i32_0 = arith.constant 0 : i32
    %c0_i32_1 = arith.constant 0 : i32
    return %c0_i32, %c0_i32_0 : i32, i32
  }
  func.func @transform_10(%arg0: i32) -> (i32, i32) {
    %c0_i32 = arith.constant 0 : i32
    %c0_i32_0 = arith.constant 0 : i32
    return %c0_i32, %arg0 : i32, i32
  }
}

</mosaic_0001>

<bundles_post_ra>
// kernel: tpu_custom_call.1
= control target key start
LH: loop header
LB: loop body
LE: loop exit
PB: predicated region body
PF: predicated region fallthrough
CT: control target
= control target key end

     0   :  { %v970_v2 = vmov 0   ;;  %s1239_s0 = inlined_call_operand.vmem [shape: f32[2,128], index: 0, kind: input, shape index: {}]   ;;  %s1240_s1 = inlined_call_operand.vmem [shape: f32[64,1], index: 1, kind: input, shape index: {}]   ;;  %s1241_s2 = inlined_call_operand.vmem [shape: f32[64,1], index: 2, kind: input, shape index: {}]   ;;  %s1242_s3 = inlined_call_operand.vmem [shape: f32[64,1], index: 3, kind: input, shape index: {}]   ;;  %s1243_s4 = inlined_call_operand.vmem [shape: f32[64,64], index: 4, kind: input, shape index: {}]   ;;  %s1244_s5 = inlined_call_operand.vmem [shape: f32[64,1], index: 5, kind: input, shape index: {}]   ;;  %s1245_s6 = inlined_call_operand.vmem [shape: f32[64,64], index: 6, kind: input, shape index: {}]   ;;  %s1246_s7 = inlined_call_operand.vmem [shape: f32[64,1], index: 7, kind: input, shape index: {}]   ;;  %s1247_s8 = inlined_call_operand.vmem [shape: f32[2,64], index: 8, kind: input, shape index: {}]   ;;  %s1248_s9 = inlined_call_operand.vmem [shape: f32[2,1], index: 9, kind: input, shape index: {}]   ;;  %s1249_s10 = inlined_call_operand.hbm [shape: f32[2,128], index: 10, kind: output, shape index: {}]  }
   0x1   :  { %v98_v0 = vld [vmem:[%s1241_s2] sm:$0xff]  ;;  %897 = vset.pattern.permute.xlu1 %v970_v2  ;;  %896 = vset.pattern.permute.xlu0 %v970_v2  ;;  %v99_v3 = vld [vmem:[%s1241_s2 + $0x8] sm:$0xff]  ;;  %v41_v5 = vld [vmem:[%s1240_s1 + $0x18] sm:$0xff] }
   0x2   :  { %v38_v1 = vld [vmem:[%s1240_s1] sm:$0xff]  ;;  %108 = vperm.xlu1 %897, %v98_v0   ;;  %v39_v4 = vld [vmem:[%s1240_s1 + $0x8] sm:$0xff]  ;;  %v40_v6 = vld [vmem:[%s1240_s1 + $0x10] sm:$0xff] }
   0x3   :  { %48 = vperm.xlu0 %896, %v38_v1   ;;  %v101_v7 = vld [vmem:[%s1241_s2 + $0x18] sm:$0xff]  ;;  %v100_v8 = vld [vmem:[%s1241_s2 + $0x10] sm:$0xff] }
   0x6   :  { %113 = vperm.xlu1 %897, %v99_v3  }
   0x7   :  { %53 = vperm.xlu0 %896, %v39_v4  }
   0xa   :  { %63 = vperm.xlu1 %897, %v41_v5  }
   0xb   :  { %58 = vperm.xlu0 %896, %v40_v6  }
   0xe   :  { %123 = vperm.xlu1 %897, %v101_v7  }
   0xf   :  { %118 = vperm.xlu0 %896, %v100_v8  }
  0x10   :  { %15 = vsyncpa [#allocation3], 0  ;;  %v167_v9 = vld [vmem:[%s1242_s3 + $0x8] sm:$0xff]  ;;  %v166_v10 = vld [vmem:[%s1242_s3] sm:$0xff]  ;;  %vm286_vm0 = vcmask 523264   ;;  %vm972_vm1 = vmmov 0  }
  0x11   :  { %v43_v11 = vld [vmem:[%s1240_s1 + $0x28] sm:$0xff]  ;;  %v42_v12 = vld [vmem:[%s1240_s1 + $0x20] sm:$0xff]  ;;  %v169_v15 = vld [vmem:[%s1242_s3 + $0x18] sm:$0xff]  ;;  %s974_s14 = smov [#allocation2]  }
  0x12   :  { %181 = vperm.xlu1 %897, %v167_v9   ;;  %v103_v13 = vld [vmem:[%s1241_s2 + $0x28] sm:$0xff]  ;;  %v102_v14 = vld [vmem:[%s1241_s2 + $0x20] sm:$0xff]  ;;  %v168_v16 = vld [vmem:[%s1242_s3 + $0x10] sm:$0xff]  ;;  %s704_s15 = sshll.u32 %s974_s14, 4  ;;  %s705_s15 = int_to_ptr.vmem [resolvable:$true] %s704_s15 }
  0x13   :  { %176 = vperm.xlu0 %896, %v166_v10   ;;  %v45_v17 = vld [vmem:[%s1240_s1 + $0x38] sm:$0xff]  ;;  %v44_v18 = vld [vmem:[%s1240_s1 + $0x30] sm:$0xff]  ;;  %v171_v21 = vld [vmem:[%s1242_s3 + $0x28] sm:$0xff]  ;;  %s946_s16 = scalar_lea.vmem %s705_s15, 32  ;;  %p951_p1 = scmp.lt.s32.totalorder %s705_s15, %s705_s15 }
  0x14   :  { %v105_v19 = vld [vmem:[%s1241_s2 + $0x38] sm:$0xff]  ;;  %v104_v20 = vld [vmem:[%s1241_s2 + $0x30] sm:$0xff]  ;;  %v170_v22 = vld [vmem:[%s1242_s3 + $0x20] sm:$0xff]  ;;  %p947_p0 = scmp.ne.s32.totalorder %s705_s15, %s946_s16  ;;  %p952_p2 = scmp.lt.s32.totalorder %s946_s16, %s946_s16 }
  0x15   :  { %v173_v23 = vld [vmem:[%s1242_s3 + $0x38] sm:$0xff]  ;;  %v172_v24 = vld [vmem:[%s1242_s3 + $0x30] sm:$0xff]  ;;  %v239_v25 = vld [vmem:[%s1244_s5 + $0x8] sm:$0xff] }
  0x16   :  { %73 = vperm.xlu1 %897, %v43_v11   ;;  %v238_v26 = vld [vmem:[%s1244_s5] sm:$0xff]  ;;  %v241_v27 = vld [vmem:[%s1244_s5 + $0x18] sm:$0xff]  ;;  %v240_v28 = vld [vmem:[%s1244_s5 + $0x10] sm:$0xff]  ;;  %p953_p3 = por %p952_p2, %p951_p1 }
  0x17   :  { %68 = vperm.xlu0 %896, %v42_v12   ;;  %v243_v29 = vld [vmem:[%s1244_s5 + $0x28] sm:$0xff]  ;;  %v242_v30 = vld [vmem:[%s1244_s5 + $0x20] sm:$0xff]  ;;  %v245_v31 = vld [vmem:[%s1244_s5 + $0x38] sm:$0xff] }
  0x18   :  { %v244_v32 = vld [vmem:[%s1244_s5 + $0x30] sm:$0xff]  ;;  %v433_v33 = vld [vmem:[%s1246_s7 + $0x8] sm:$0xff]  ;;  %v432_v34 = vld [vmem:[%s1246_s7] sm:$0xff]  ;;  %p954_p4 = pnand %p953_p3, %p947_p0 }
  0x19   :  { %v230_v35 = vld [vmem:[%s1243_s4] sm:$0xff]  ;;  %v435_v36 = vld [vmem:[%s1246_s7 + $0x18] sm:$0xff]  ;;  %v434_v37 = vld [vmem:[%s1246_s7 + $0x10] sm:$0xff] }
  0x1a   :  { %133 = vperm.xlu1 %897, %v103_v13   ;;  %788 = vmatprep.mubr.msk.f32.mxu0 %vm286_vm0, %v230_v35  ;;  %v437_v38 = vld [vmem:[%s1246_s7 + $0x28] sm:$0xff]  ;;  %v436_v39 = vld [vmem:[%s1246_s7 + $0x20] sm:$0xff]  ;;  %v439_v40 = vld [vmem:[%s1246_s7 + $0x38] sm:$0xff] }
  0x1b   :  { %128 = vperm.xlu0 %896, %v102_v14   ;;  %v438_v41 = vld [vmem:[%s1246_s7 + $0x30] sm:$0xff]  ;;  %v618_v42 = vld [vmem:[%s1248_s9] sm:$0x3] }
  0x1c   :  { %v713_v47 = vld [vmem:[%s1239_s0 + $0x1] ss:$0 sm:$0xff]  ;;  %v712_v48 = vld [vmem:[%s1239_s0] ss:$0 sm:$0xff] }
  0x1e   :  { %191 = vperm.xlu1 %897, %v169_v15  }
  0x1f   :  { %186 = vperm.xlu0 %896, %v168_v16  }
  0x22   :  { %83 = vperm.xlu1 %897, %v45_v17  }
  0x23   :  { %78 = vperm.xlu0 %896, %v44_v18  }
  0x26   :  { %143 = vperm.xlu1 %897, %v105_v19  }
  0x27   :  { %138 = vperm.xlu0 %896, %v104_v20  }
  0x2a   :  { %201 = vperm.xlu1 %897, %v171_v21  }
  0x2b   :  { %196 = vperm.xlu0 %896, %v170_v22  }
  0x2e   :  { %211 = vperm.xlu1 %897, %v173_v23  }
  0x2f   :  { %206 = vperm.xlu0 %896, %v172_v24  }
  0x32   :  { %253 = vperm.xlu1 %897, %v239_v25  }
  0x33   :  { %248 = vperm.xlu0 %896, %v238_v26  }
  0x36   :  { %263 = vperm.xlu1 %897, %v241_v27  }
  0x37   :  { %258 = vperm.xlu0 %896, %v240_v28  }
  0x3a   :  { %273 = vperm.xlu1 %897, %v243_v29  }
  0x3b   :  { %268 = vperm.xlu0 %896, %v242_v30  }
  0x3e   :  { %283 = vperm.xlu1 %897, %v245_v31  }
  0x3f   :  { %278 = vperm.xlu0 %896, %v244_v32  }
  0x42   :  { %447 = vperm.xlu1 %897, %v433_v33  }
  0x43   :  { %442 = vperm.xlu0 %896, %v432_v34  }
  0x46   :  { %457 = vperm.xlu1 %897, %v435_v36  }
  0x47   :  { %452 = vperm.xlu0 %896, %v434_v37  }
  0x4a   :  { %467 = vperm.xlu1 %897, %v437_v38  }
  0x4b   :  { %462 = vperm.xlu0 %896, %v436_v39  }
  0x4e   :  { %477 = vperm.xlu1 %897, %v439_v40  }
  0x4f   :  { %472 = vperm.xlu0 %896, %v438_v41  }
  0x53   :  { %621 = vperm.xlu0 %896, %v618_v42  }
  0x81   :  { %v109_v43 = vpop.permute.xlu1 %108 }
  0x82   :  { %v49_v44 = vpop.permute.xlu0 %48  ;;  %v150_v51 = vmul.f32 %v713_v47, %v109_v43 }
  0x83   :  { %v90_v52 = vmul.f32 %v712_v48, %v49_v44 }
  0x85   :  { %v114_v45 = vpop.permute.xlu1 %113  ;;  %v158_v58 = vadd.f32 %v150_v51, %v90_v52  ;;  %v233_v51 = vld [vmem:[%s1243_s4 + $0x18] sm:$0xff]  ;;  %v234_v52 = vld [vmem:[%s1243_s4 + $0x20] sm:$0xff] }
  0x86   :  { %v54_v46 = vpop.permute.xlu0 %53  ;;  %v151_v53 = vmul.f32 %v713_v47, %v114_v45 }
  0x87   :  { %v91_v54 = vmul.f32 %v712_v48, %v54_v46 }
  0x89   :  { %v64_v49 = vpop.permute.xlu1 %63  ;;  %v159_v57 = vadd.f32 %v151_v53, %v91_v54  ;;  %v235_v53 = vld [vmem:[%s1243_s4 + $0x28] sm:$0xff]  ;;  %v236_v54 = vld [vmem:[%s1243_s4 + $0x30] sm:$0xff] }
  0x8a   :  { %v59_v50 = vpop.permute.xlu0 %58  ;;  %v93_v5 = vmul.f32 %v712_v48, %v64_v49  ;;  %v231_v49 = vld [vmem:[%s1243_s4 + $0x8] sm:$0xff] }
  0x8b   :  { %v92_v6 = vmul.f32 %v712_v48, %v59_v50  ;;  %v232_v50 = vld [vmem:[%s1243_s4 + $0x10] sm:$0xff] }
  0x8d   :  { %v124_v55 = vpop.permute.xlu1 %123 }
  0x8e   :  { %v119_v56 = vpop.permute.xlu0 %118  ;;  %v153_v1 = vmul.f32 %v713_v47, %v124_v55  ;;  %v237_v55 = vld [vmem:[%s1243_s4 + $0x38] sm:$0xff] }
  0x8f   :  { %v152_v2 = vmul.f32 %v713_v47, %v119_v56  ;;  %v424_v56 = vld [vmem:[%s1245_s6] sm:$0xff] }
  0x90   :  { %v161_v7 = vadd.f32 %v153_v1, %v93_v5  ;;  %816 = vmatprep.mubr.msk.f32.mxu1 %vm286_vm0, %v424_v56 }
  0x91   :  { %v182_v59 = vpop.permute.xlu1 %181  ;;  %v160_v8 = vadd.f32 %v152_v2, %v92_v6 }
  0x92   :  { %v177_v60 = vpop.permute.xlu0 %176  ;;  %v215_v61 = vadd.f32 %v182_v59, %v159_v57 }
  0x93   :  { %v214_v62 = vadd.f32 %v177_v60, %v158_v58 }
  0x94   :  { %898 = vtanh.f32 %v215_v61 }
  0x95   :  { %900 = vtanh.f32 %v214_v62  ;;  %v74_v63 = vpop.permute.xlu1 %73 }
  0x96   :  { %v69_v0 = vpop.permute.xlu0 %68  ;;  %v95_v22 = vmul.f32 %v712_v48, %v74_v63 }
  0x97   :  { %v94_v23 = vmul.f32 %v712_v48, %v69_v0 }
  0x99   :  { %v134_v3 = vpop.permute.xlu1 %133 }
  0x9a   :  { %v129_v4 = vpop.permute.xlu0 %128  ;;  %v155_v18 = vmul.f32 %v713_v47, %v134_v3 }
  0x9b   :  { %v154_v19 = vmul.f32 %v713_v47, %v129_v4 }
  0x9c   :  { %v163_v26 = vadd.f32 %v155_v18, %v95_v22 }
  0x9d   :  { %v192_v9 = vpop.permute.xlu1 %191  ;;  %v162_v27 = vadd.f32 %v154_v19, %v94_v23 }
  0x9e   :  { %v187_v10 = vpop.permute.xlu0 %186  ;;  %v899_v11 = vpop.eup %898  ;;  %v217_v12 = vadd.f32 %v192_v9, %v161_v7 }
  0x9f   :  { %v216_v13 = vadd.f32 %v187_v10, %v160_v8  ;;  %v901_v14 = vpop.eup %900 }
  0xa0   :  { %902 = vtanh.f32 %v217_v12  ;;  %v847_v15 = vpack.c.bf16 %v899_v11, %v901_v14 }
  0xa1   :  { %904 = vtanh.f32 %v216_v13  ;;  %v84_v16 = vpop.permute.xlu1 %83 }
  0xa2   :  { %v79_v17 = vpop.permute.xlu0 %78  ;;  %848 = vmatprep.subr.bf16.mxu0 %v847_v15  ;;  %v97_v31 = vmul.f32 %v712_v48, %v84_v16 }
  0xa3   :  { %850 = vmatpush3.bf16.msra.mxu0 %v847_v15  ;;  %v96_v32 = vmul.f32 %v712_v48, %v79_v17 }
  0xa5   :  { %v144_v20 = vpop.permute.xlu1 %143 }
  0xa6   :  { %v139_v21 = vpop.permute.xlu0 %138  ;;  %v157_v24 = vmul.f32 %v713_v47, %v144_v20 }
  0xa7   :  { %v156_v25 = vmul.f32 %v713_v47, %v139_v21 }
  0xa8   :  { %v165_v36 = vadd.f32 %v157_v24, %v97_v31  ;;  %v427_v31 = vld [vmem:[%s1245_s6 + $0x18] sm:$0xff] }
  0xa9   :  { %v202_v28 = vpop.permute.xlu1 %201  ;;  %v164_v37 = vadd.f32 %v156_v25, %v96_v32  ;;  %v428_v32 = vld [vmem:[%s1245_s6 + $0x20] sm:$0xff] }
  0xaa   :  { %v197_v29 = vpop.permute.xlu0 %196  ;;  %v903_v30 = vpop.eup %902  ;;  %v219_v33 = vadd.f32 %v202_v28, %v163_v26 }
  0xab   :  { %v218_v34 = vadd.f32 %v197_v29, %v162_v27  ;;  %v905_v35 = vpop.eup %904  ;;  %v425_v29 = vld [vmem:[%s1245_s6 + $0x8] sm:$0xff] }
  0xac   :  { %906 = vtanh.f32 %v219_v33  ;;  %v851_v38 = vpack.c.bf16 %v903_v30, %v905_v35  ;;  %v426_v30 = vld [vmem:[%s1245_s6 + $0x10] sm:$0xff]  ;;  %v429_v33 = vld [vmem:[%s1245_s6 + $0x28] sm:$0xff]  ;;  %v431_v35 = vld [vmem:[%s1245_s6 + $0x38] sm:$0xff] }
  0xad   :  { %908 = vtanh.f32 %v218_v34  ;;  %v212_v39 = vpop.permute.xlu1 %211  ;;  %v430_v34 = vld [vmem:[%s1245_s6 + $0x30] sm:$0xff] }
  0xae   :  { %v207_v40 = vpop.permute.xlu0 %206  ;;  %v221_v41 = vadd.f32 %v212_v39, %v165_v36  ;;  %852 = vmatprep.subr.bf16.mxu0 %v851_v38  ;;  %v971_v36 = vmov 0.0|0.0  }
  0xaf   :  { %v220_v42 = vadd.f32 %v207_v40, %v164_v37  ;;  %854 = vmatpush3.bf16.msra.mxu0 %v851_v38  ;;  %v973_v37 = vmov 0.0  }
  0xb0   :  { %910 = vtanh.f32 %v221_v41 }
  0xb1   :  { %912 = vtanh.f32 %v220_v42  ;;  %v254_v57 = vpop.permute.xlu1 %253 }
  0xb2   :  { %v249_v58 = vpop.permute.xlu0 %248 }
  0xb5   :  { %v264_v59 = vpop.permute.xlu1 %263 }
  0xb6   :  { %v907_v43 = vpop.eup %906  ;;  %v259_v61 = vpop.permute.xlu0 %258 }
  0xb7   :  { %v909_v44 = vpop.eup %908 }
  0xb8   :  { %v855_v45 = vpack.c.bf16 %v907_v43, %v909_v44 }
  0xb9   :  { %v274_v4 = vpop.permute.xlu1 %273 }
  0xba   :  { %v911_v46 = vpop.eup %910  ;;  %856 = vmatprep.subr.bf16.mxu0 %v855_v45  ;;  %v269_v6 = vpop.permute.xlu0 %268 }
  0xbb   :  { %v913_v47 = vpop.eup %912  ;;  %858 = vmatpush3.bf16.msra.mxu0 %v855_v45 }
  0xbc   :  { %v859_v48 = vpack.c.bf16 %v911_v46, %v913_v47 }
  0xbd   :  { %v284_v11 = vpop.permute.xlu1 %283 }
  0xbe   :  { %860 = vmatprep.subr.bf16.mxu0 %v859_v48  ;;  %v279_v14 = vpop.permute.xlu0 %278 }
  0xbf   :  { %862 = vmatpush3.bf16.msra.mxu0 %v859_v48 }
  0xc0   :  { %879 = vmatprep.subr.bf16.mxu0 %v971_v36 }
  0xc1   :  { %v448_v38 = vpop.permute.xlu1 %447 }
  0xc2   :  { %789 = vmatmul.mubr.msk.f32.vlgmr.msra.gmra.mrb[0].mxu0 %vm286_vm0, %v231_v49  ;;  %v443_v39 = vpop.permute.xlu0 %442 }
  0xc3   :  { %791 = vmatprep.mubr.msk.f32.mxu0 %vm286_vm0, %v232_v50 }
  0xc5   :  { %v458_v40 = vpop.permute.xlu1 %457 }
  0xc6   :  { %792 = vmatmul.mubr.msk.f32.gmra.mrb[2].mxu0 %vm286_vm0, %v233_v51  ;;  %v453_v42 = vpop.permute.xlu0 %452 }
  0xc7   :  { %794 = vmatprep.mubr.msk.f32.mxu0 %vm286_vm0, %v234_v52 }
  0xc9   :  { %v468_v49 = vpop.permute.xlu1 %467 }
  0xca   :  { %795 = vmatmul.mubr.msk.f32.gmra.mrb[4].mxu0 %vm286_vm0, %v235_v53  ;;  %v463_v51 = vpop.permute.xlu0 %462 }
  0xcb   :  { %797 = vmatprep.mubr.msk.f32.mxu0 %vm286_vm0, %v236_v54 }
  0xcd   :  { %v478_v56 = vpop.permute.xlu1 %477 }
  0xce   :  { %798 = vmatmul.mubr.msk.f32.gmra.mrb[6].mxu0 %vm286_vm0, %v237_v55 }
  0xcf   :  { %844 = vmatprep.mubr.msk.f32.mxu0 %vm972_vm1, %v973_v37 }
 0x195   :  { %v790_v60 = vpop.f32.mrb[0].mxu0 }
 0x196   :  { %v383_v62 = vadd.f32 %v790_v60, %v254_v57  ;;  %v377_v63 = vpop.f32.mrb[1].mxu0 }
 0x197   :  { %v378_v0 = vadd.f32 %v377_v63, %v249_v58 }
 0x198   :  { %914 = vtanh.f32 %v383_v62 }
 0x199   :  { %916 = vtanh.f32 %v378_v0  ;;  %v793_v1 = vpop.f32.mrb[2].mxu0 }
 0x19a   :  { %v393_v2 = vadd.f32 %v793_v1, %v264_v59  ;;  %v387_v3 = vpop.f32.mrb[3].mxu0  ;;  %v473_v59 = vpop.permute.xlu0 %472 }
 0x19b   :  { %v388_v5 = vadd.f32 %v387_v3, %v259_v61 }
 0x19c   :  { %918 = vtanh.f32 %v393_v2 }
 0x19d   :  { %920 = vtanh.f32 %v388_v5  ;;  %v796_v7 = vpop.f32.mrb[4].mxu0 }
 0x19e   :  { %v403_v8 = vadd.f32 %v796_v7, %v274_v4  ;;  %v397_v9 = vpop.f32.mrb[5].mxu0 }
 0x19f   :  { %v398_v10 = vadd.f32 %v397_v9, %v269_v6 }
 0x1a0   :  { %922 = vtanh.f32 %v403_v8 }
 0x1a1   :  { %924 = vtanh.f32 %v398_v10  ;;  %v799_v12 = vpop.f32.mrb[6].mxu0  ;;  %v617_v10 = vld [vmem:[%s1247_s8] sm:$0x3] }
 0x1a2   :  { %v915_v13 = vpop.eup %914  ;;  %v413_v15 = vadd.f32 %v799_v12, %v284_v11  ;;  %v407_v16 = vpop.f32.mrb[7].mxu0 }
 0x1a3   :  { %v917_v17 = vpop.eup %916  ;;  %v408_v18 = vadd.f32 %v407_v16, %v279_v14  ;;  %v622_v11 = vpop.permute.xlu0 %621 }
 0x1a4   :  { %926 = vtanh.f32 %v413_v15  ;;  %v863_v19 = vpack.c.bf16 %v915_v13, %v917_v17 }
 0x1a5   :  { %928 = vtanh.f32 %v408_v18 }
 0x1a6   :  { %v919_v20 = vpop.eup %918  ;;  %864 = vmatprep.subr.bf16.mxu1 %v863_v19 }
 0x1a7   :  { %v921_v21 = vpop.eup %920  ;;  %866 = vmatpush3.bf16.msra.mxu1 %v863_v19 }
 0x1a8   :  { %v867_v22 = vpack.c.bf16 %v919_v20, %v921_v21 }
 0x1aa   :  { %v923_v23 = vpop.eup %922  ;;  %868 = vmatprep.subr.bf16.mxu1 %v867_v22 }
 0x1ab   :  { %v925_v24 = vpop.eup %924  ;;  %870 = vmatpush3.bf16.msra.mxu1 %v867_v22 }
 0x1ac   :  { %v871_v25 = vpack.c.bf16 %v923_v23, %v925_v24 }
 0x1ae   :  { %v927_v26 = vpop.eup %926  ;;  %872 = vmatprep.subr.bf16.mxu1 %v871_v25 }
 0x1af   :  { %v929_v27 = vpop.eup %928  ;;  %874 = vmatpush3.bf16.msra.mxu1 %v871_v25 }
 0x1b0   :  { %v875_v28 = vpack.c.bf16 %v927_v26, %v929_v27 }
 0x1b2   :  { %876 = vmatprep.subr.bf16.mxu1 %v875_v28 }
 0x1b3   :  { %878 = vmatpush3.bf16.msra.mxu1 %v875_v28 }
 0x1b6   :  { %817 = vmatmul.mubr.msk.f32.vlgmr.msra.gmra.mrb[0].mxu1 %vm286_vm0, %v425_v29 }
 0x1b7   :  { %819 = vmatprep.mubr.msk.f32.mxu1 %vm286_vm0, %v426_v30 }
 0x1ba   :  { %820 = vmatmul.mubr.msk.f32.gmra.mrb[2].mxu1 %vm286_vm0, %v427_v31 }
 0x1bb   :  { %822 = vmatprep.mubr.msk.f32.mxu1 %vm286_vm0, %v428_v32 }
 0x1be   :  { %823 = vmatmul.mubr.msk.f32.gmra.mrb[4].mxu1 %vm286_vm0, %v429_v33 }
 0x1bf   :  { %825 = vmatprep.mubr.msk.f32.mxu1 %vm286_vm0, %v430_v34 }
 0x1c2   :  { %826 = vmatmul.mubr.msk.f32.gmra.mrb[6].mxu1 %vm286_vm0, %v431_v35 }
 0x289   :  { %v818_v41 = vpop.f32.mrb[0].mxu1 }
 0x28a   :  { %v576_v43 = vadd.f32 %v818_v41, %v448_v38  ;;  %v570_v44 = vpop.f32.mrb[1].mxu1 }
 0x28b   :  { %v571_v45 = vadd.f32 %v570_v44, %v443_v39 }
 0x28c   :  { %930 = vtanh.f32 %v576_v43 }
 0x28d   :  { %932 = vtanh.f32 %v571_v45  ;;  %v821_v46 = vpop.f32.mrb[2].mxu1 }
 0x28e   :  { %v586_v47 = vadd.f32 %v821_v46, %v458_v40  ;;  %v580_v48 = vpop.f32.mrb[3].mxu1 }
 0x28f   :  { %v581_v50 = vadd.f32 %v580_v48, %v453_v42 }
 0x290   :  { %934 = vtanh.f32 %v586_v47 }
 0x291   :  { %936 = vtanh.f32 %v581_v50  ;;  %v824_v52 = vpop.f32.mrb[4].mxu1 }
 0x292   :  { %v596_v53 = vadd.f32 %v824_v52, %v468_v49  ;;  %v590_v54 = vpop.f32.mrb[5].mxu1 }
 0x293   :  { %v591_v55 = vadd.f32 %v590_v54, %v463_v51 }
 0x294   :  { %938 = vtanh.f32 %v596_v53 }
 0x295   :  { %940 = vtanh.f32 %v591_v55  ;;  %v827_v57 = vpop.f32.mrb[6].mxu1 }
 0x296   :  { %v931_v58 = vpop.eup %930  ;;  %v606_v60 = vadd.f32 %v827_v57, %v478_v56  ;;  %v600_v61 = vpop.f32.mrb[7].mxu1 }
 0x297   :  { %v933_v62 = vpop.eup %932  ;;  %v601_v63 = vadd.f32 %v600_v61, %v473_v59 }
 0x298   :  { %942 = vtanh.f32 %v606_v60  ;;  %v880_v0 = vpack.c.bf16 %v931_v58, %v933_v62 }
 0x299   :  { %944 = vtanh.f32 %v601_v63 }
 0x29a   :  { %v935_v1 = vpop.eup %934  ;;  %881 = vmatpush3.bf16.msra.mxu0 %v880_v0 }
 0x29b   :  { %v937_v2 = vpop.eup %936  ;;  %882 = vmatprep.subr.bf16.mxu0 %v971_v36 }
 0x29c   :  { %v883_v3 = vpack.c.bf16 %v935_v1, %v937_v2 }
 0x29e   :  { %v939_v4 = vpop.eup %938  ;;  %884 = vmatpush3.bf16.msra.mxu0 %v883_v3 }
 0x29f   :  { %v941_v5 = vpop.eup %940  ;;  %885 = vmatprep.subr.bf16.mxu0 %v971_v36 }
 0x2a0   :  { %v886_v6 = vpack.c.bf16 %v939_v4, %v941_v5 }
 0x2a2   :  { %v943_v7 = vpop.eup %942  ;;  %887 = vmatpush3.bf16.msra.mxu0 %v886_v6 }
 0x2a3   :  { %v945_v8 = vpop.eup %944  ;;  %888 = vmatprep.subr.bf16.mxu0 %v971_v36 }
 0x2a4   :  { %v889_v9 = vpack.c.bf16 %v943_v7, %v945_v8 }
 0x2a6   :  { %890 = vmatpush3.bf16.msra.mxu0 %v889_v9 }
 0x2a9   :  { %845 = vmatmul.mubr.msk.f32.vlgmr.msra.gmra.mrb[8].mxu0 %vm286_vm0, %v617_v10 }
 0x37c   :  { %v693_v12 = vpop.f32.mrb[8].mxu0 }
 0x37d   :  { %v694_v13 = vadd.f32 %v693_v12, %v622_v11  ;;  %v846_v14 = vpop.f32.mrb[9].mxu0 }
 0x37f   :  { %697 = vst [vmem:[#allocation2] sm:$0x3] %v694_v13 }
 0x380   :  { %957 = shalt.err (!%p954_p4)
}
 0x381   :  { %s958_s8 = scalar_lea.hbm %s1249_s10, 32 }
 0x382   :  { %p959_p5 = scmp.ne.s32.totalorder %s1249_s10, %s958_s8  ;;  %p962_p6 = scmp.lt.u32.totalorder %s958_s8, %s1249_s10 }
 0x384   :  { %p964_p7 = pnand %p962_p6, %p959_p5 }
 0x386   :  { %967 = shalt.err (!%p964_p7)
}
 0x387   :  { %707 = dma.vmem_to_hbm [thread:$0]  %s705_s15, 32, %s1249_s10, [#allocation3]  }
 0x388   :  { %968 = dma.done.wait [#allocation3], 32  }
 0x389   :  { %969 = vsyncadd [#allocation3], 4294967264 }
 0x38a   :  { %711 = vsyncpa [#allocation3], 1 }

</bundles_post_ra>
